<compile_context>
chip_gen: v5e
topology: v5e:2x2
jax: 0.10.0
libtpu: 0.0.40
codegen_flags: <defaults>
</compile_context>

<pallas_src>
import functools

import jax
import jax.numpy as jnp
from jax.experimental import pallas as pl
from jax.experimental.pallas import tpu as pltpu


def _round_up(x: int, m: int) -> int:
    return ((x + m - 1) // m) * m


def _ls_ce_kernel(x_ref, tgt_ref, out_ref, acc_ref, *, smoothing: float, n_true: int):
    i = pl.program_id(0)

    @pl.when(i == 0)
    def _init():
        acc_ref[0] = jnp.float32(0.0)

    confidence = 1.0 - smoothing

    x = x_ref[...].astype(jnp.float32)           # (TN, C)  (reductions in f32)
    tn, c = x.shape

    # Stable log-sum-exp pieces (never materialize logprobs).
    m = jnp.max(x, axis=-1, keepdims=True)                              # (TN, 1)
    lse = jnp.log(jnp.sum(jnp.exp(x - m), axis=-1, keepdims=True))      # (TN, 1)

    # Target logit via masked select (no one-hot f32 array, no extra multiply).
    tgt = tgt_ref[...]                                                  # (TN, 1) int32
    col = jax.lax.broadcasted_iota(jnp.int32, (tn, c), 1)
    x_t = jnp.sum(jnp.where(col == tgt, x, 0.0), axis=-1, keepdims=True)  # (TN, 1)
    sum_x = jnp.sum(x, axis=-1, keepdims=True)                            # (TN, 1)

    # loss = confidence*(m+lse-x_t) + smoothing*(m+lse-sum_x/C)
    #      = (m+lse) - confidence*x_t - (smoothing/C)*sum_x
    loss = (m + lse) - confidence * x_t - (smoothing / c) * sum_x        # (TN, 1)

    # Mask rows past the true batch size (zero-padded tail tile).
    row = i * tn + jax.lax.broadcasted_iota(jnp.int32, (tn, 1), 0)
    loss = jnp.where(row < n_true, loss, 0.0)

    acc_ref[0] += jnp.sum(loss)

    @pl.when(i == pl.num_programs(0) - 1)
    def _finalize():
        out_ref[0, 0] = acc_ref[0] / jnp.float32(n_true)


def label_smoothing_cross_entropy(x, target, smoothing: float = 0.1, block_rows: int = 512):
    """x: (N, C) float logits, target: (N,) int labels. Returns scalar f32 loss."""
    n, c = x.shape
    itemsize = jnp.dtype(x.dtype).itemsize

    # Sublane multiple for the (sub, 128) tile of the input dtype.
    sub = 8 if itemsize >= 4 else (16 if itemsize == 2 else 32)

    # Size the row tile so double-buffered input blocks stay well under a
    # conservative scoped-VMEM budget (safe for v7x's 64 MiB VMEM as well).
    budget = 24 * 1024 * 1024
    bytes_per_row = c * itemsize + 128 * 4        # logits row + lane-padded target row
    max_rows = max(sub, ((budget // (2 * bytes_per_row)) // sub) * sub)
    tn = int(min(block_rows, max_rows, _round_up(n, sub)))
    tn = max(sub, (tn // sub) * sub)

    n_pad = _round_up(n, tn)
    num_tiles = n_pad // tn

    x_p = x if n_pad == n else jnp.pad(x, ((0, n_pad - n), (0, 0)))
    tgt2d = target.astype(jnp.int32).reshape(n, 1)
    tgt_p = tgt2d if n_pad == n else jnp.pad(tgt2d, ((0, n_pad - n), (0, 0)))

    kernel = functools.partial(
        _ls_ce_kernel, smoothing=float(smoothing), n_true=int(n)
    )

    cost = pl.CostEstimate(
        flops=5 * n * c,
        transcendentals=n * c,                    # exp per element
        bytes_accessed=n * c * itemsize + n * 4 + 4,
    )

    out = pl.pallas_call(
        kernel,
        out_shape=jax.ShapeDtypeStruct((1, 1), jnp.float32),
        grid_spec=pltpu.PrefetchScalarGridSpec(
            num_scalar_prefetch=0,
            grid=(num_tiles,),
            in_specs=[
                pl.BlockSpec((tn, c), lambda i: (i, 0)),   # logits tile
                pl.BlockSpec((tn, 1), lambda i: (i, 0)),   # targets tile (int32)
            ],
            out_specs=pl.BlockSpec(memory_space=pltpu.SMEM),  # scalar result, resident
            scratch_shapes=[pltpu.SMEM((1,), jnp.float32)],   # running sum
        ),
        compiler_params=pltpu.CompilerParams(
            dimension_semantics=("arbitrary",),   # running-sum reduction axis
        ),
        cost_estimate=cost,
    )(x_p, tgt_p)
    return out[0, 0]


if __name__ == "__main__":
    key = jax.random.PRNGKey(0)
    k_x, k_t = jax.random.split(key)

    # Small shapes; N deliberately not a multiple of the sublane tile to
    # exercise the padded/masked tail path.
    N, C = 10, 32
    x = jax.random.normal(k_x, (N, C), dtype=jnp.float32)
    target = jax.random.randint(k_t, (N,), 0, C, dtype=jnp.int32)

    loss = label_smoothing_cross_entropy(x, target, smoothing=0.1)
    loss = jax.block_until_ready(loss)

    # Pure-JAX reference (matches the PyTorch module's forward).
    logprobs = jax.nn.log_softmax(x, axis=-1)
    nll = -jnp.take_along_axis(logprobs, target[:, None], axis=-1)[:, 0]
    smooth = -jnp.mean(logprobs, axis=-1)
    ref = jnp.mean(0.9 * nll + 0.1 * smooth)

    assert jnp.allclose(loss, ref, atol=1e-5, rtol=1e-5), (loss, ref)
    print("KERNEL_OK")
</pallas_src>

<mosaic_0001>
module attributes {stable_mosaic.version = 11 : i64} {
  func.func @_ls_ce_kernel(%arg0: i32, %arg1: memref<16x32xf32, #tpu.memory_space<vmem>>, %arg2: memref<16x1xi32, #tpu.memory_space<vmem>>, %arg3: memref<1x1xf32, #tpu.memory_space<smem>>, %arg4: memref<1xf32, #tpu.memory_space<smem>>) attributes {dimension_semantics = [#tpu.dimension_semantics<arbitrary>], iteration_bounds = array<i64: 1>, scalar_prefetch = 0 : i64, scratch_operands = 1 : i64, tpu.core_type = #tpu.core_type<tc>, window_params = [{transform_indices = @transform_0, window_bounds = array<i64: 16, 32>}, {transform_indices = @transform_1, window_bounds = array<i64: 16, 1>}, {transform_indices = @transform_2, window_bounds = array<i64: 1, 1>}]} {
    %c0_i32 = arith.constant 0 : i32
    %0 = arith.cmpi eq, %arg0, %c0_i32 : i32
    %1 = arith.extui %0 : i1 to i32
    %c0_i32_0 = arith.constant 0 : i32
    %2 = arith.cmpi ne, %1, %c0_i32_0 : i32
    scf.if %2 {
      %cst_16 = arith.constant 0.000000e+00 : f32
      %c0_17 = arith.constant 0 : index
      %47 = memref.load %arg4[%c0_17] : memref<1xf32, #tpu.memory_space<smem>>
      memref.store %cst_16, %arg4[%c0_17] : memref<1xf32, #tpu.memory_space<smem>>
    } else {
    }
    %c0 = arith.constant 0 : index
    %c0_1 = arith.constant 0 : index
    %3 = vector.load %arg1[%c0, %c0_1] : memref<16x32xf32, #tpu.memory_space<vmem>>, vector<16x32xf32>
    %cst = arith.constant dense<0xFF800000> : vector<16xf32>
    %4 = vector.multi_reduction <maximumf>, %3, %cst [1] : vector<16x32xf32> to vector<16xf32>
    %5 = vector.shape_cast %4 : vector<16xf32> to vector<16x1xf32>
    %6 = vector.broadcast %5 : vector<16x1xf32> to vector<16x32xf32>
    %7 = arith.subf %3, %6 : vector<16x32xf32>
    %8 = math.exp %7 : vector<16x32xf32>
    %cst_2 = arith.constant dense<0.000000e+00> : vector<16xf32>
    %9 = vector.multi_reduction <add>, %8, %cst_2 [1] : vector<16x32xf32> to vector<16xf32>
    %10 = vector.shape_cast %9 : vector<16xf32> to vector<16x1xf32>
    %11 = math.log %10 : vector<16x1xf32>
    %c0_3 = arith.constant 0 : index
    %c0_4 = arith.constant 0 : index
    %12 = vector.load %arg2[%c0_3, %c0_4] : memref<16x1xi32, #tpu.memory_space<vmem>>, vector<16x1xi32>
    %13 = tpu.iota {dimensions = array<i32: 1>} : vector<16x32xi32>
    %14 = vector.broadcast %12 : vector<16x1xi32> to vector<16x32xi32>
    %15 = arith.cmpi eq, %13, %14 : vector<16x32xi32>
    %cst_5 = arith.constant 0.000000e+00 : f32
    %16 = vector.broadcast %cst_5 : f32 to vector<16x32xf32>
    %17 = arith.select %15, %3, %16 : vector<16x32xi1>, vector<16x32xf32>
    %cst_6 = arith.constant dense<0.000000e+00> : vector<16xf32>
    %18 = vector.multi_reduction <add>, %17, %cst_6 [1] : vector<16x32xf32> to vector<16xf32>
    %19 = vector.shape_cast %18 : vector<16xf32> to vector<16x1xf32>
    %cst_7 = arith.constant dense<0.000000e+00> : vector<16xf32>
    %20 = vector.multi_reduction <add>, %3, %cst_7 [1] : vector<16x32xf32> to vector<16xf32>
    %21 = vector.shape_cast %20 : vector<16xf32> to vector<16x1xf32>
    %22 = arith.addf %5, %11 : vector<16x1xf32>
    %cst_8 = arith.constant 0.899999976 : f32
    %23 = vector.broadcast %cst_8 : f32 to vector<16x1xf32>
    %24 = arith.mulf %23, %19 : vector<16x1xf32>
    %25 = arith.subf %22, %24 : vector<16x1xf32>
    %cst_9 = arith.constant 3.125000e-03 : f32
    %26 = vector.broadcast %cst_9 : f32 to vector<16x1xf32>
    %27 = arith.mulf %26, %21 : vector<16x1xf32>
    %28 = arith.subf %25, %27 : vector<16x1xf32>
    %c16_i32 = arith.constant 16 : i32
    %29 = arith.muli %arg0, %c16_i32 : i32
    %30 = tpu.iota {dimensions = array<i32: 0>} : vector<16x1xi32>
    %31 = vector.broadcast %29 : i32 to vector<16x1xi32>
    %32 = arith.addi %31, %30 : vector<16x1xi32>
    %c10_i32 = arith.constant 10 : i32
    %33 = vector.broadcast %c10_i32 : i32 to vector<16x1xi32>
    %34 = arith.cmpi slt, %32, %33 : vector<16x1xi32>
    %cst_10 = arith.constant 0.000000e+00 : f32
    %35 = vector.broadcast %cst_10 : f32 to vector<16x1xf32>
    %36 = arith.select %34, %28, %35 : vector<16x1xi1>, vector<16x1xf32>
    %c0_11 = arith.constant 0 : index
    %37 = memref.load %arg4[%c0_11] : memref<1xf32, #tpu.memory_space<smem>>
    %38 = vector.shape_cast %36 : vector<16x1xf32> to vector<1x16x1xf32>
    %cst_12 = arith.constant dense<0.000000e+00> : vector<1xf32>
    %39 = vector.multi_reduction <add>, %38, %cst_12 [1, 2] : vector<1x16x1xf32> to vector<1xf32>
    %40 = vector.shape_cast %39 : vector<1xf32> to vector<1x1x1xf32>
    %41 = vector.extract %40[0, 0, 0] : f32 from vector<1x1x1xf32>
    %42 = arith.addf %37, %41 : f32
    %c0_13 = arith.constant 0 : index
    %43 = memref.load %arg4[%c0_13] : memref<1xf32, #tpu.memory_space<smem>>
    memref.store %42, %arg4[%c0_13] : memref<1xf32, #tpu.memory_space<smem>>
    %c0_i32_14 = arith.constant 0 : i32
    %44 = arith.cmpi eq, %arg0, %c0_i32_14 : i32
    %45 = arith.extui %44 : i1 to i32
    %c0_i32_15 = arith.constant 0 : i32
    %46 = arith.cmpi ne, %45, %c0_i32_15 : i32
    scf.if %46 {
      %c0_16 = arith.constant 0 : index
      %47 = memref.load %arg4[%c0_16] : memref<1xf32, #tpu.memory_space<smem>>
      %cst_17 = arith.constant 1.000000e+01 : f32
      %48 = arith.divf %47, %cst_17 : f32
      %c0_18 = arith.constant 0 : index
      %c0_19 = arith.constant 0 : index
      %49 = memref.load %arg3[%c0_18, %c0_19] : memref<1x1xf32, #tpu.memory_space<smem>>
      memref.store %48, %arg3[%c0_18, %c0_19] : memref<1x1xf32, #tpu.memory_space<smem>>
    } else {
    }
    return
  }
  func.func @transform_0(%arg0: i32) -> (i32, i32) {
    %c0_i32 = arith.constant 0 : i32
    %c0_i32_0 = arith.constant 0 : i32
    return %arg0, %c0_i32 : i32, i32
  }
  func.func @transform_1(%arg0: i32) -> (i32, i32) {
    %c0_i32 = arith.constant 0 : i32
    %c0_i32_0 = arith.constant 0 : i32
    return %arg0, %c0_i32 : i32, i32
  }
  func.func @transform_2(%arg0: i32) -> (i32, i32) {
    %c0_i32 = arith.constant 0 : i32
    %c0_i32_0 = arith.constant 0 : i32
    %c0_i32_1 = arith.constant 0 : i32
    return %c0_i32, %c0_i32_0 : i32, i32
  }
}

</mosaic_0001>

<bundles_post_ra>
// kernel: tpu_custom_call.1
= control target key start
LH: loop header
LB: loop body
LE: loop exit
PB: predicated region body
PF: predicated region fallthrough
CT: control target
= control target key end

     0   :  { %vm20_vm0 = vcmask 261120   ;;  %v170_v3 = vmov 0   ;;  %s211_s0 = inlined_call_operand.vmem [shape: f32[16,32], index: 0, kind: input, shape index: {}]   ;;  %s212_s1 = inlined_call_operand.vmem [shape: s32[16,1], index: 1, kind: input, shape index: {}]   ;;  %s213_s2 = inlined_call_operand.hbm [shape: f32[1,1], index: 2, kind: output, shape index: {}]  }
   0x1   :  { %v19_v0 = vld [vmem:[%s211_s0 + $0x8] sm:$0xff]  ;;  %144 = vset.pattern.permute.xlu1 %v170_v3  ;;  %145 = vset.pattern.permute.xlu0 %v170_v3 }
   0x2   :  { %v44_v1 = vld [vmem:[%s212_s1 + $0x8] sm:$0xff]  ;;  %v24_v2 = vsel %vm20_vm0, %v19_v0, -inf }
   0x3   :  { %7 = vsyncpa [#allocation4], 0  ;;  %25 = vmax.xlane.f32.xlu0 %v24_v2  ;;  %51 = vperm.xlu1 %144, %v44_v1   ;;  %v18_v4 = vld [vmem:[%s211_s0] sm:$0xff]  ;;  %v45_v7 = vlaneseq  ;;  %v66_v26 = vsel %vm20_vm0, %v19_v0, 0.0  ;;  %vm91_vm4 = vcmask 7168   ;;  %v171_v53 = vmov 10.0  }
   0x4   :  { %v21_v5 = vsel %vm20_vm0, %v18_v4, -inf  ;;  %v43_v6 = vld [vmem:[%s212_s1] sm:$0xff]  ;;  %v63_v17 = vsel %vm20_vm0, %v18_v4, 0.0  ;;  %s127_s17 = sshll.u32 %s213_s2, 4  ;;  %s172_s21 = smov [#allocation3]   ;;  %s128_s17 = int_to_ptr.hbm [resolvable:$true] %s127_s17 }
   0x5   :  { %v46_v8 = vand.u32 127, %v45_v7  ;;  %v81_v32 = vshrl.u32 %v45_v7, 7 }
   0x7   :  { %v82_v35 = vadd.s32 8, %v81_v32 }
   0x9   :  { %vm87_vm3 = vcmp.lt.s32.totalorder %v82_v35, 10 }
   0xb   :  { %22 = vmax.xlane.f32.xlu0 %v21_v5  ;;  %48 = vperm.xlu1 %144, %v43_v6  }
  0x75   :  { %v52_v9 = vpop.permute.xlu1 %51 }
  0x76   :  { %v26_v10 = vpop.xlane.xlu0 %25  ;;  %vm54_vm1 = vcmp.eq.s32.totalorder %v46_v8, %v52_v9 }
  0x77   :  { %v28_v11 = vsub.f32 %v19_v0, %v26_v10  ;;  %v56_v12 = vsel %vm54_vm1, %v19_v0, 0.0 }
  0x78   :  { %v60_v13 = vsel %vm20_vm0, %v56_v12, 0.0 }
  0x79   :  { %v31_v14 = vmul.f32 1.442695, %v28_v11  ;;  %61 = vadd.xlane.f32.xlu0 %v60_v13 }
  0x7b   :  { %146 = vpow2.f32 %v31_v14 }
  0x7d   :  { %v49_v15 = vpop.permute.xlu1 %48 }
  0x7e   :  { %v23_v16 = vpop.xlane.xlu0 %22  ;;  %vm53_vm2 = vcmp.eq.s32.totalorder %v46_v8, %v49_v15 }
  0x7f   :  { %v27_v18 = vsub.f32 %v18_v4, %v23_v16  ;;  %v55_v19 = vsel %vm53_vm2, %v18_v4, 0.0 }
  0x80   :  { %v57_v20 = vsel %vm20_vm0, %v55_v19, 0.0 }
  0x81   :  { %v147_v21 = vpop.eup %146  ;;  %v29_v22 = vmul.f32 1.442695, %v27_v18  ;;  %58 = vadd.xlane.f32.xlu1 %v57_v20  ;;  %64 = vadd.xlane.f32.xlu0 %v63_v17 }
  0x82   :  { %v36_v23 = vsel %vm20_vm0, %v147_v21, 0.0 }
  0x83   :  { %148 = vpow2.f32 %v29_v22  ;;  %37 = vadd.xlane.f32.xlu2 %v36_v23 }
  0x89   :  { %v149_v24 = vpop.eup %148 }
  0x8a   :  { %v33_v25 = vsel %vm20_vm0, %v149_v24, 0.0 }
  0x8b   :  { %34 = vadd.xlane.f32.xlu2 %v33_v25 }
  0x93   :  { %67 = vadd.xlane.f32.xlu2 %v66_v26 }
  0xec   :  { %v62_v29 = vpop.xlane.xlu0 %61 }
  0xed   :  { %v72_v34 = vmul.f32 0.9, %v62_v29 }
  0xf4   :  { %v59_v37 = vpop.xlane.xlu1 %58  ;;  %v65_v38 = vpop.xlane.xlu0 %64 }
  0xf5   :  { %v71_v44 = vmul.f32 0.9, %v59_v37  ;;  %v75_v45 = vmul.f32 0.003125, %v65_v38 }
  0xf6   :  { %v38_v27 = vpop.xlane.xlu2 %37 }
  0xf7   :  { %150 = vlog2.f32 %v38_v27 }
  0xfd   :  { %v151_v28 = vpop.eup %150 }
  0xfe   :  { %v35_v30 = vpop.xlane.xlu2 %34  ;;  %v42_v31 = vmul.f32 0.6931472, %v151_v28 }
  0xff   :  { %152 = vlog2.f32 %v35_v30 }
 0x100   :  { %v70_v33 = vadd.f32 %v42_v31, %v26_v10  ;;  %154 = vrcp.f32 %v171_v53 }
 0x102   :  { %v74_v41 = vsub.f32 %v70_v33, %v72_v34 }
 0x105   :  { %v153_v36 = vpop.eup %152 }
 0x106   :  { %v40_v39 = vmul.f32 0.6931472, %v153_v36  ;;  %v68_v40 = vpop.xlane.xlu2 %67  ;;  %v155_v54 = vpop.eup %154 }
 0x107   :  { %v76_v42 = vmul.f32 0.003125, %v68_v40  ;;  %v112_v55 = vmul.f32 10.0, %v155_v54  ;;  %vm116_vm5 = vweird.f32 %v155_v54 }
 0x108   :  { %v69_v43 = vadd.f32 %v40_v39, %v23_v16 }
 0x109   :  { %v78_v46 = vsub.f32 %v74_v41, %v76_v42  ;;  %v113_v56 = vsub.f32 1.0, %v112_v55 }
 0x10a   :  { %v73_v47 = vsub.f32 %v69_v43, %v71_v44 }
 0x10b   :  { %v89_v48 = vsel %vm87_vm3, %v78_v46, 0.0  ;;  %v114_v60 = vmul.f32 %v155_v54, %v113_v56 }
 0x10c   :  { %v77_v49 = vsub.f32 %v73_v47, %v75_v45  ;;  %v93_v51 = vsel %vm91_vm4, %v89_v48, 0.0 }
 0x10d   :  { %v115_v63 = vadd.f32 %v155_v54, %v114_v60 }
 0x10e   :  { %v92_v50 = vsel %vm91_vm4, %v77_v49, 0.0 }
 0x10f   :  { %v94_v52 = vadd.f32 %v93_v51, %v92_v50  ;;  %v117_v2 = vsel %vm116_vm5, %v155_v54, %v115_v63 }
 0x111   :  { %95 = vadd.xlane.f32.xlu2 %v94_v52 }
 0x184   :  { %v96_v57 = vpop.xlane.xlu2 %95 }
 0x185   :  { %v97_v58 = vrot.slane %v96_v57, 4 }
 0x187   :  { %v98_v59 = vadd.f32 %v97_v58, %v96_v57 }
 0x189   :  { %v99_v61 = vrot.slane %v98_v59, 2 }
 0x18b   :  { %v100_v62 = vadd.f32 %v99_v61, %v98_v59 }
 0x18d   :  { %v101_v0 = vrot.slane %v100_v62, 1 }
 0x18f   :  { %v102_v1 = vadd.f32 %v101_v0, %v100_v62 }
 0x191   :  { %137 = vpush %v102_v1 }
 0x192   :  { %139 = vpush %v117_v2 }
 0x1c2   :  { %s138_s18 = spop %137 }
 0x1c3   :  { %s140_s19 = spop %139 }
 0x1c4   :  { %s119_s20 = smul.f32 %s140_s19, %s138_s18 }
 0x1c6   :  { %121 = sst [smem:[#allocation3]] %s119_s20 }
 0x1c7   :  { %130 = dma.smem_to_hbm %s172_s21, 16, %s128_s17, [#allocation4]  }
 0x1c8   :  { %168 = dma.done.wait [#allocation4], 16  }
 0x1c9   :  { %169 = vsyncadd [#allocation4], 4294967280 }
 0x1ca   :  { %135 = sfence }
 0x1cb   :  { %136 = vsyncpa [#allocation4], 1 }

</bundles_post_ra>
